<compile_context>
chip_gen: v7x
topology: tpu7x:2x2x1
jax: 0.10.0
libtpu: 0.0.40
codegen_flags: <defaults>
</compile_context>

<pallas_src>
import jax
import jax.numpy as jnp
from jax.experimental import pallas as pl
from jax.experimental.pallas import tpu as pltpu


def _round_up(x, m):
    return ((x + m - 1) // m) * m


def _make_root_kernel(n_children, residual, nb):
    """Kernel args: w_0..w_{n-1}, bias, x_0..x_{n-1}, o.

    Each x_i block is (nb, C_i, tile); the output block is (nb, Cout, tile).
    """

    def kernel(*refs):
        w_refs = refs[:n_children]
        bias_ref = refs[n_children]
        x_refs = refs[n_children + 1: 2 * n_children + 1]
        o_ref = refs[-1]

        ws = [w_refs[i][...] for i in range(n_children)]      # (Cout, C_i) f32
        bias = bias_ref[...]                                  # (Cout, 1)   f32

        for n in range(nb):                                   # nb is tiny (1..8)
            x0 = x_refs[0][n]                                 # (C0, tile)
            y = jnp.dot(ws[0], x0, preferred_element_type=jnp.float32)
            for i in range(1, n_children):
                y = y + jnp.dot(ws[i], x_refs[i][n],
                                preferred_element_type=jnp.float32)
            y = y + bias                                      # folded BN bias
            if residual:
                y = y + x0.astype(jnp.float32)                # children[0] residual
            o_ref[n] = jnp.maximum(y, 0.0).astype(o_ref.dtype)

    return kernel


def _choose_tile(rows, tile_cols, fits_one):
    """Largest lane tile that (a) is a multiple of 128 (or the full extent when
    rows < 128), (b) fits the VMEM budget, (c) preferably divides rows exactly
    so no partial last block exists."""
    if rows <= 128:
        return rows                                  # single full-extent block
    max_tile = (min(tile_cols, rows) // 128) * 128   # never larger than the array
    tile = max(128, max_tile)
    while tile > 128 and not fits_one(tile):
        tile -= 128
    for t in range(tile, 127, -128):                 # prefer an exact divisor
        if rows % t == 0:
            return t
    return tile                                      # partial last block (masked)


def root_forward(children, w, gamma, beta, running_mean, running_var,
                 *, residual=True, eps=1e-5, tile_cols=2048,
                 vmem_budget_bytes=20 * 1024 * 1024):
    """children: list of NCHW arrays.  w: (Cout, Cin, 1, 1) conv weight (bias=False)."""
    n_children = len(children)
    N, _, H, Wd = children[0].shape
    child_cs = [int(c.shape[1]) for c in children]
    Cin = sum(child_cs)
    Cout = int(w.shape[0])
    assert int(w.shape[1]) == Cin, "weight Cin must equal sum of children channels"
    if residual:
        assert child_cs[0] == Cout, (
            "residual=True requires children[0] channels == out_channels")

    rows = H * Wd
    io_dtype = children[0].dtype
    io_bytes = jnp.dtype(io_dtype).itemsize

    # Per-step VMEM footprint with nb batch rows folded into the block.
    def _footprint(nb, tile):
        stream = 2 * nb * tile * (Cin + Cout) * io_bytes      # dbl-buffered in+out
        acc = nb * tile * Cout * 4                            # f32 accumulator temps
        weights = 4 * Cout * (Cin + 1)                        # resident folded W + bias
        return stream + acc + weights

    tile = _choose_tile(rows, tile_cols,
                        lambda t: _footprint(1, t) <= vmem_budget_bytes)
    n_tiles = (rows + tile - 1) // tile

    # Fold the batch into the block when it fits in VMEM and the grid keeps
    # >= 2 steps (so both v7x TensorCores stay busy), or when N == 1 anyway.
    fold_batch = (_footprint(N, tile) <= vmem_budget_bytes
                  and (n_tiles >= 2 or N == 1))
    nb = N if fold_batch else 1

    # NCHW -> (N, C_i, H*W): zero-cost contiguous reshape; no padding.
    xs = [c.reshape(N, c.shape[1], rows) for c in children]

    # Fold eval-mode BN into the conv weight + a per-channel bias.
    scale = (gamma / jnp.sqrt(running_var + eps)).astype(jnp.float32)       # (Cout,)
    w2d = w.reshape(Cout, Cin).astype(jnp.float32)
    w_scaled = w2d * scale[:, None]                                         # (Cout, Cin)
    bias = (beta.astype(jnp.float32)
            - running_mean.astype(jnp.float32) * scale).reshape(Cout, 1)    # (Cout, 1)

    # Per-child weight slices (avoids materializing the channel concat).
    w_slices, off = [], 0
    for c_i in child_cs:
        w_slices.append(w_scaled[:, off:off + c_i])
        off += c_i

    kernel = _make_root_kernel(n_children, residual, nb)

    if fold_batch:
        grid = (n_tiles,)
        w_map = lambda t: (0, 0)
        x_map = lambda t: (0, 0, t)
        semantics = ("parallel",)
    else:
        grid = (N, n_tiles)
        w_map = lambda n, t: (0, 0)
        x_map = lambda n, t: (n, 0, t)
        semantics = ("parallel", "parallel")

    in_specs = (
        [pl.BlockSpec((Cout, c_i), w_map) for c_i in child_cs]        # weights (resident)
        + [pl.BlockSpec((Cout, 1), w_map)]                            # bias (resident)
        + [pl.BlockSpec((nb, c_i, tile), x_map) for c_i in child_cs]  # children
    )
    out_spec = pl.BlockSpec((nb, Cout, tile), x_map)

    vmem_limit = int(min(48 * 1024 * 1024,
                         max(16 * 1024 * 1024, 2 * _footprint(nb, tile))))

    out = pl.pallas_call(
        kernel,
        out_shape=jax.ShapeDtypeStruct((N, Cout, rows), io_dtype),
        grid_spec=pltpu.PrefetchScalarGridSpec(
            num_scalar_prefetch=0,
            grid=grid,
            in_specs=in_specs,
            out_specs=out_spec,
        ),
        compiler_params=pltpu.CompilerParams(
            dimension_semantics=semantics,
            vmem_limit_bytes=vmem_limit),
    )(*w_slices, bias, *xs)

    return out.reshape(N, Cout, H, Wd)        # zero-cost reshape back to NCHW


def _reference(children, w, gamma, beta, mean, var, *, residual, eps=1e-5):
    x = jnp.concatenate(children, axis=1)                                   # NCHW
    y = jnp.einsum('nchw,oc->nohw', x, w.reshape(w.shape[0], w.shape[1]))
    scale = (gamma / jnp.sqrt(var + eps)).reshape(1, -1, 1, 1)
    bias = (beta - mean * gamma / jnp.sqrt(var + eps)).reshape(1, -1, 1, 1)
    y = y * scale + bias
    if residual:
        y = y + children[0]
    return jnp.maximum(y, 0.0)


if __name__ == "__main__":
    key = jax.random.PRNGKey(0)
    k1, k2, k3, k4, k5, k6, k7, k8 = jax.random.split(key, 8)

    # Root(in_channels=16, out_channels=8, kernel_size=1, residual=True)
    N, H, W = 2, 16, 16
    C_child = 8
    Cout = 8
    Cin = 2 * C_child     # concat of two children

    child0 = jax.random.normal(k1, (N, C_child, H, W), jnp.float32)
    child1 = jax.random.normal(k2, (N, C_child, H, W), jnp.float32)

    # deterministic synthetic parameters (no checkpoint loading)
    w = 0.1 * jax.random.normal(k3, (Cout, Cin, 1, 1), jnp.float32)   # 1x1 conv, bias=False
    gamma = 1.0 + 0.05 * jax.random.normal(k4, (Cout,), jnp.float32)  # BN weight
    beta = 0.05 * jax.random.normal(k5, (Cout,), jnp.float32)         # BN bias
    running_mean = 0.1 * jax.random.normal(k6, (Cout,), jnp.float32)
    running_var = jnp.ones((Cout,), jnp.float32)

    children = [child0, child1]

    # 1) residual=True, rows divisible by 128 -> exact tiles, grid (N, n_tiles)
    out = jax.block_until_ready(
        root_forward(children, w, gamma, beta, running_mean, running_var,
                     residual=True))
    ref = _reference(children, w, gamma, beta, running_mean, running_var,
                     residual=True)
    assert out.shape == (N, Cout, H, W)
    assert jnp.allclose(out, ref, atol=1e-4, rtol=1e-4)

    # 2) residual=False path
    out_nr = jax.block_until_ready(
        root_forward(children, w, gamma, beta, running_mean, running_var,
                     residual=False))
    ref_nr = _reference(children, w, gamma, beta, running_mean, running_var,
                        residual=False)
    assert jnp.allclose(out_nr, ref_nr, atol=1e-4, rtol=1e-4)

    # 3) rows not a multiple of 128 (20x20=400) -> partial last block (no host
    #    pad/slice) and batch folded into the block (grid = (n_tiles,)).
    H2 = W2 = 20
    child0b = jax.random.normal(k7, (N, C_child, H2, W2), jnp.float32)
    child1b = jax.random.normal(k8, (N, C_child, H2, W2), jnp.float32)
    children_b = [child0b, child1b]
    out_b = jax.block_until_ready(
        root_forward(children_b, w, gamma, beta, running_mean, running_var,
                     residual=True, tile_cols=384))
    ref_b = _reference(children_b, w, gamma, beta, running_mean, running_var,
                       residual=True)
    assert out_b.shape == (N, Cout, H2, W2)
    assert jnp.allclose(out_b, ref_b, atol=1e-4, rtol=1e-4)

    print("KERNEL_OK")
</pallas_src>

<mosaic_0001>
module attributes {stable_mosaic.version = 11 : i64} {
  func.func @kernel(%arg0: i32, %arg1: i32, %arg2: memref<8x8xf32, #tpu.memory_space<vmem>>, %arg3: memref<8x8xf32, #tpu.memory_space<vmem>>, %arg4: memref<8x1xf32, #tpu.memory_space<vmem>>, %arg5: memref<1x8x256xf32, #tpu.memory_space<vmem>>, %arg6: memref<1x8x256xf32, #tpu.memory_space<vmem>>, %arg7: memref<1x8x256xf32, #tpu.memory_space<vmem>>) attributes {dimension_semantics = [#tpu.dimension_semantics<parallel>, #tpu.dimension_semantics<parallel>], iteration_bounds = array<i64: 2, 1>, scalar_prefetch = 0 : i64, scratch_operands = 0 : i64, tpu.core_type = #tpu.core_type<tc>, window_params = [{pipeline_mode = #tpu.pipeline_mode<synchronous>, transform_indices = @transform_0, window_bounds = array<i64: 8, 8>}, {pipeline_mode = #tpu.pipeline_mode<synchronous>, transform_indices = @transform_1, window_bounds = array<i64: 8, 8>}, {pipeline_mode = #tpu.pipeline_mode<synchronous>, transform_indices = @transform_2, window_bounds = array<i64: 8, 1>}, {transform_indices = @transform_3, window_bounds = array<i64: 1, 8, 256>}, {transform_indices = @transform_4, window_bounds = array<i64: 1, 8, 256>}, {transform_indices = @transform_5, window_bounds = array<i64: 1, 8, 256>}]} {
    %c0 = arith.constant 0 : index
    %c0_0 = arith.constant 0 : index
    %0 = vector.load %arg2[%c0, %c0_0] : memref<8x8xf32, #tpu.memory_space<vmem>>, vector<8x8xf32>
    %c0_1 = arith.constant 0 : index
    %c0_2 = arith.constant 0 : index
    %1 = vector.load %arg3[%c0_1, %c0_2] : memref<8x8xf32, #tpu.memory_space<vmem>>, vector<8x8xf32>
    %c0_3 = arith.constant 0 : index
    %c0_4 = arith.constant 0 : index
    %2 = vector.load %arg4[%c0_3, %c0_4] : memref<8x1xf32, #tpu.memory_space<vmem>>, vector<8x1xf32>
    %c0_5 = arith.constant 0 : index
    %c0_6 = arith.constant 0 : index
    %c0_7 = arith.constant 0 : index
    %3 = vector.load %arg5[%c0_5, %c0_6, %c0_7] : memref<1x8x256xf32, #tpu.memory_space<vmem>>, vector<1x8x256xf32>
    %4 = vector.shape_cast %3 : vector<1x8x256xf32> to vector<8x256xf32>
    %cst = arith.constant dense<0.000000e+00> : vector<8x256xf32>
    %5 = tpu.matmul %0, %4, %cst {dimension_numbers = #tpu.dot_dimension_numbers<[1], [0], [0], [1], [0, 0, 1, 1], [], []>} : vector<8x8xf32>, vector<8x256xf32>, vector<8x256xf32> -> vector<8x256xf32>
    %c0_8 = arith.constant 0 : index
    %c0_9 = arith.constant 0 : index
    %c0_10 = arith.constant 0 : index
    %6 = vector.load %arg6[%c0_8, %c0_9, %c0_10] : memref<1x8x256xf32, #tpu.memory_space<vmem>>, vector<1x8x256xf32>
    %7 = vector.shape_cast %6 : vector<1x8x256xf32> to vector<8x256xf32>
    %cst_11 = arith.constant dense<0.000000e+00> : vector<8x256xf32>
    %8 = tpu.matmul %1, %7, %cst_11 {dimension_numbers = #tpu.dot_dimension_numbers<[1], [0], [0], [1], [0, 0, 1, 1], [], []>} : vector<8x8xf32>, vector<8x256xf32>, vector<8x256xf32> -> vector<8x256xf32>
    %9 = arith.addf %5, %8 : vector<8x256xf32>
    %10 = vector.broadcast %2 : vector<8x1xf32> to vector<8x256xf32>
    %11 = arith.addf %9, %10 : vector<8x256xf32>
    %12 = arith.addf %11, %4 : vector<8x256xf32>
    %cst_12 = arith.constant 0.000000e+00 : f32
    %13 = vector.broadcast %cst_12 : f32 to vector<8x256xf32>
    %14 = arith.maximumf %12, %13 : vector<8x256xf32>
    %c0_13 = arith.constant 0 : index
    %c0_14 = arith.constant 0 : index
    %c0_15 = arith.constant 0 : index
    %15 = vector.load %arg7[%c0_13, %c0_14, %c0_15] : memref<1x8x256xf32, #tpu.memory_space<vmem>>, vector<1x8x256xf32>
    %16 = vector.shape_cast %15 : vector<1x8x256xf32> to vector<8x256xf32>
    %17 = vector.shape_cast %14 : vector<8x256xf32> to vector<1x8x256xf32>
    tpu.vector_store %arg7[%c0_13, %c0_14, %c0_15], %17 {strides = array<i32>} : memref<1x8x256xf32, #tpu.memory_space<vmem>>, vector<1x8x256xf32>,
    return
  }
  func.func @transform_0(%arg0: i32, %arg1: i32) -> (i32, i32) {
    %c0_i32 = arith.constant 0 : i32
    %c0_i32_0 = arith.constant 0 : i32
    %c0_i32_1 = arith.constant 0 : i32
    return %c0_i32, %c0_i32_0 : i32, i32
  }
  func.func @transform_1(%arg0: i32, %arg1: i32) -> (i32, i32) {
    %c0_i32 = arith.constant 0 : i32
    %c0_i32_0 = arith.constant 0 : i32
    %c0_i32_1 = arith.constant 0 : i32
    return %c0_i32, %c0_i32_0 : i32, i32
  }
  func.func @transform_2(%arg0: i32, %arg1: i32) -> (i32, i32) {
    %c0_i32 = arith.constant 0 : i32
    %c0_i32_0 = arith.constant 0 : i32
    %c0_i32_1 = arith.constant 0 : i32
    return %c0_i32, %c0_i32_0 : i32, i32
  }
  func.func @transform_3(%arg0: i32, %arg1: i32) -> (i32, i32, i32) {
    %c0_i32 = arith.constant 0 : i32
    %c0_i32_0 = arith.constant 0 : i32
    return %arg0, %c0_i32, %arg1 : i32, i32, i32
  }
  func.func @transform_4(%arg0: i32, %arg1: i32) -> (i32, i32, i32) {
    %c0_i32 = arith.constant 0 : i32
    %c0_i32_0 = arith.constant 0 : i32
    return %arg0, %c0_i32, %arg1 : i32, i32, i32
  }
  func.func @transform_5(%arg0: i32, %arg1: i32) -> (i32, i32, i32) {
    %c0_i32 = arith.constant 0 : i32
    %c0_i32_0 = arith.constant 0 : i32
    return %arg0, %c0_i32, %arg1 : i32, i32, i32
  }
}

</mosaic_0001>

<bundles_post_ra>
// kernel: tpu_custom_call.1
= control target key start
LH: loop header
LB: loop body
LE: loop exit
PB: predicated region body
PF: predicated region fallthrough
CT: control target
= control target key end

     0   :  { %s1202_s0 = inlined_call_operand.vmem [shape: f32[8,8], index: 0, kind: input, shape index: {}]   ;;  %s1203_s1 = inlined_call_operand.hbm [shape: f32[8,8], index: 1, kind: input, shape index: {}]   ;;  %s1204_s2 = inlined_call_operand.vmem [shape: f32[8,1], index: 2, kind: input, shape index: {}]   ;;  %s1205_s3 = inlined_call_operand.hbm [shape: f32[2,8,256], index: 3, kind: input, shape index: {}]   ;;  %s1206_s4 = inlined_call_operand.hbm [shape: f32[2,8,256], index: 4, kind: input, shape index: {}]   ;;  %s1207_s5 = inlined_call_operand.hbm [shape: f32[2,8,256], index: 5, kind: output, shape index: {}]  }
   0x1   :  { %1214 = sst [smem:[#allocation13_spill]] %s1205_s3 }
   0x2   :  { %10 = vsyncpa [#allocation3], 0 }
   0x3   :  { %11 = vsyncpa [#allocation6], 0 }
   0x4   :  { %13 = vsyncpa [#allocation6 + $0x1], 0 }
   0x5   :  { %14 = vsyncpa [#allocation4], 0 }
   0x6   :  { %16 = vsyncpa [#allocation4 + $0x1], 0  ;;  %s940_s18 = smov 0   ;;  %s942_s19 = smov 0  }
   0x7   :  { %s944_s20 = smov 0   ;;  %s946_s21 = smov 0  }
   0x8   :  { %s948_s22 = smov 0   ;;  %s950_s23 = smov 0  }
   0x9 LB: > { %s34_s24 = sadd.s32 1, %s898_s22  ;;  %s106_s25 = sadd.s32 1, %s890_s20  ;;  %s902_s23 = sphi %s950_s23, %s22_s23   ;;  %s898_s22 = sphi %s948_s22, %s1238_s22   ;;  %s894_s21 = sphi %s946_s21, %s1237_s21   ;;  %s890_s20 = sphi %s944_s20, %s1236_s20   ;;  %s886_s19 = sphi %s942_s19, %s1235_s19   ;;  %s882_s18 = sphi %s940_s18, %s1234_s18  }
   0xa   : > { %p36_p0 = scmp.ge.s32.totalorder %s34_s24, 2  ;;  %p113_p1 = scmp.ne.s32.totalorder %s890_s20, %s886_s19 }
   0xb   : > { %p114_p2 = scmp.eq.s32.totalorder %s902_s23, 0  ;;  %p673_p5 = scmp.lt.s32.totalorder %s902_s23, 2 }
   0xc   : > { %s1240_s24 = smov (%p36_p0, %s34_s24), 0  ;;  %s216_s27 = sand.u32 1, %s902_s23  }
   0xd   : > { %1215 = sst [smem:[#allocation12_spill]] %s1240_s24  ;;  %p115_p4 = por %p114_p2, %p113_p1 }
   0xe   : > { %s101_s26 = ssub.s32 %s898_s22, %s1240_s24  ;;  %s218_s28 = sand.u32 1, %s890_s20  }
   0xf   : > { %p104_p6 = scmp.eq.s32.totalorder %s101_s26, 0  ;;  %s642_s29 = sshll.u32 %s898_s22, 8 }
  0x10   : > { %s990_s6 = sshll.u32 %s218_s28, 4  ;;  %s1216_s3 = sld [smem:[#allocation13_spill]] }
  0x11   : > { %s988_s30 = scalar_select %p104_p6, %s890_s20, %s106_s25  }
  0x12   : > { %p999_p7 = pnand %p673_p5, %p115_p4  ;;  %s220_s11 = scalar_lea.vmem [#allocation5], %s990_s6 }
  0x13   : > { %s230_s12 = sshll.u32 %s220_s11, 4  ;;  %s1006_s13 = scalar_lea.sflag [#allocation6], %s216_s27  ;;  %s1004_s12 = int_to_ptr.vmem [resolvable:$true] %s230_s12 }
  0x14   : > { %p730_p9 = pneg %p999_p7 }
  0x16   : > { %s997_s9 = scalar_lea.hbm %s1216_s3, %s642_s29  ;;  %s733_s17 = scalar_lea.hbm %s1216_s3, 512 }
  0x17   : > { %s728_s14 = scalar_lea.hbm %s997_s9, 256  ;;  %p734_p12 = scmp.lt.u32.totalorder %s997_s9, %s1216_s3 }
  0x18   : > { %p729_p8 = scmp.ne.s32.totalorder %s997_s9, %s728_s14  ;;  %p735_p13 = scmp.lt.u32.totalorder %s733_s17, %s728_s14 }
  0x19   : > { %p737_p2 = scmp.lt.u32.totalorder %s728_s14, %s997_s9 }
  0x1a   : > { %p731_p10 = pnand %p730_p9, %p729_p8  ;;  %p736_p0 = por %p735_p13, %p734_p12 }
  0x1c   : > { %p732_p11 = pneg %p731_p10  ;;  %p738_p4 = por %p737_p2, %p736_p0 }
  0x1e   : > { %p739_p5 = pnand %p738_p4, %p732_p11 }
  0x20   : > { %742 = shalt.err (!%p739_p5)
}
  0x21   : > { %s743_s27 = scalar_lea.vmem %s1004_s12, 256  ;;  %s904_s28 = smov [#allocation5]  }
  0x22   : > { %p744_p6 = scmp.ne.s32.totalorder %s1004_s12, %s743_s27  ;;  %s748_s7 = sshll.u32 %s904_s28, 4  ;;  %s749_s7 = int_to_ptr.vmem [resolvable:$false] %s748_s7 }
  0x23   : > { %s750_s8 = scalar_lea.vmem %s749_s7, 512  ;;  %p751_p3 = scmp.lt.s32.totalorder %s1004_s12, %s749_s7 }
  0x24   : > { %p746_p8 = pnand %p744_p6, %p730_p9  ;;  %p752_p12 = scmp.lt.s32.totalorder %s750_s8, %s743_s27 }
  0x26   : > { %p747_p10 = pneg %p746_p8  ;;  %p753_p13 = por %p752_p12, %p751_p3 }
  0x28   : > { %p754_p0 = pnand %p753_p13, %p747_p10 }
  0x2a   : > { %757 = shalt.err (!%p754_p0)
}
  0x2b   : > { %664 = dma.hbm_to_vmem [thread:$0]  (!%p999_p7), %s997_s9, 256, %s1004_s12, %s1006_s13  }
  0x2c   : > { %s1035_s11 = sadd.s32 4294967295, %s902_s23   ;;  %s620_s14 = sadd.s32 4294967294, %s902_s23  }
  0x2d   : > { %p119_p3 = scmp.ne.s32.totalorder %s886_s19, %s882_s18  ;;  %p1209_p11 = scmp.eq.s32.totalorder %s1035_s11, 0 }
  0x2e   : > { %p173_p2 = scmp.eq.s32.totalorder %s1035_s11, 1  ;;  %p179_p4 = scmp.eq.s32.totalorder %s620_s14, 1 }
  0x2f   : > { %p621_p5 = scmp.ge.s32.totalorder %s902_s23, 1  ;;  %p1045_p6 = por %p1209_p11, %p119_p3 }
  0x30   : > { %p1052_p8 = por %p173_p2, %p113_p1  ;;  %p1056_p10 = por %p179_p4, %p119_p3 }
  0x31   : > { %s1218_s15 = scalar_select %p1045_p6, 1, 0 }
  0x32   : > { %s1219_s9 = scalar_select %p1052_p8, 1, 0 }
  0x33   : > { %s1220_s12 = scalar_select %p1056_p10, 1, 0 }
  0x34   : > { %p186_p12 = scmp.lt.s32.totalorder %s902_s23, 3  ;;  %s1066_s25 = scalar_lea.hbm %s1206_s4, %s642_s29 }
  0x35   : > { %s905_s27 = smov [#allocation2]   ;;  %s241_s7 = scalar_lea.vmem [#allocation7], %s990_s6 }
  0x36   : > { %p1068_p13 = pnand %p621_p5, %p186_p12  ;;  %s1072_s28 = sshll.u32 %s905_s27, 4  ;;  %s203_s28 = int_to_ptr.vmem [resolvable:$true] %s1072_s28 }
  0x37   : > { %s251_s8 = sshll.u32 %s241_s7, 4  ;;  %s758_s14 = scalar_lea.hbm %s1066_s25, 256  ;;  %s252_s8 = int_to_ptr.vmem [resolvable:$true] %s251_s8 }
  0x38   : > { %s1221_s26 = scalar_select %p1068_p13, 1, 0 }
  0x39   : > { %p759_p0 = scmp.ne.s32.totalorder %s1066_s25, %s758_s14  ;;  %s763_s17 = scalar_lea.hbm %s1206_s4, 512 }
  0x3a   : > { %p764_p4 = scmp.lt.u32.totalorder %s1066_s25, %s1206_s4  ;;  %p765_p5 = scmp.lt.u32.totalorder %s763_s17, %s758_s14 }
  0x3b   : > { %p761_p3 = pnand %p759_p0, %p730_p9  ;;  %p767_p11 = scmp.lt.u32.totalorder %s758_s14, %s1066_s25 }
  0x3c   : > { %p766_p12 = por %p765_p5, %p764_p4 }
  0x3d   : > { %p762_p2 = pneg %p761_p3 }
  0x3e   : > { %p768_p10 = por %p767_p11, %p766_p12 }
  0x40   : > { %p769_p1 = pnand %p768_p10, %p762_p2 }
  0x42   : > { %772 = shalt.err (!%p769_p1)
}
  0x43   : > { %s773_s6 = scalar_lea.vmem %s252_s8, 256  ;;  %s906_s27 = smov [#allocation7]  }
  0x44   : > { %p774_p8 = scmp.ne.s32.totalorder %s252_s8, %s773_s6  ;;  %s778_s7 = sshll.u32 %s906_s27, 4  ;;  %s779_s7 = int_to_ptr.vmem [resolvable:$false] %s778_s7 }
  0x45   : > { %s780_s29 = scalar_lea.vmem %s779_s7, 512  ;;  %p781_p6 = scmp.lt.s32.totalorder %s252_s8, %s779_s7 }
  0x46   : > { %p776_p0 = pnand %p774_p8, %p730_p9  ;;  %p782_p13 = scmp.lt.s32.totalorder %s780_s29, %s773_s6 }
  0x48   : > { %p777_p3 = pneg %p776_p0  ;;  %p783_p4 = por %p782_p13, %p781_p6 }
  0x4a   : > { %p784_p5 = pnand %p783_p4, %p777_p3 }
  0x4c   : > { %787 = shalt.err (!%p784_p5)
}
  0x4d   : > { %667 = dma.hbm_to_vmem [thread:$0]  (!%p999_p7), %s1066_s25, 256, %s252_s8, %s1006_s13  }
  0x4e   : > { %p1222_p9 = scmp.eq.s32.totalorder %s1035_s11, 0  ;;  %p1223_p11 = scmp.ne.s32.totalorder %s1221_s26, 0 }
  0x4f   : > { %s788_s16 = scalar_lea.hbm %s1203_s1, 128 }
  0x50   : > { %p1224_p8 = pneg %p1223_p11  ;;  %p789_p6 = scmp.ne.s32.totalorder %s1203_s1, %s788_s16 }
  0x51   : > { %p795_p2 = scmp.lt.u32.totalorder %s788_s16, %s1203_s1 }
  0x52   : > { %p1103_p10 = pnand %p1224_p8, %p1222_p9 }
  0x54   : > { %p790_p13 = pneg %p1103_p10 }
  0x56   : > { %p791_p7 = pnand %p790_p13, %p789_p6 }
  0x58   : > { %p792_p1 = pneg %p791_p7 }
  0x5a   : > { %p797_p12 = pnand %p795_p2, %p792_p1 }
  0x5c   : > { %800 = shalt.err (!%p797_p12)
}
  0x5d   : > { %s801_s8 = scalar_lea.vmem %s203_s28, 128  ;;  %p809_p5 = scmp.lt.s32.totalorder %s203_s28, %s203_s28 }
  0x5e   : > { %p802_p0 = scmp.ne.s32.totalorder %s203_s28, %s801_s8  ;;  %p810_p9 = scmp.lt.s32.totalorder %s801_s8, %s801_s8 }
  0x60   : > { %p804_p3 = pnand %p802_p0, %p790_p13  ;;  %p811_p8 = por %p810_p9, %p809_p5 }
  0x62   : > { %p805_p4 = pneg %p804_p3 }
  0x64   : > { %p812_p11 = pnand %p811_p8, %p805_p4 }
  0x66   : > { %815 = shalt.err (!%p812_p11)
}
  0x67   : > { %660 = dma.hbm_to_vmem [thread:$0]  (!%p1103_p10), %s1203_s1, 128, %s203_s28, [#allocation3]  }
  0x68   : > { %p1226_p6 = scmp.ne.s32.totalorder %s1221_s26, 0 }
  0x69   : > { %p1227_p7 = scmp.eq.s32.totalorder (!%p1226_p6), %s1035_s11, 0 }
  0x6a   : > { %260 = sbr.rel (%p1226_p6) target bundleno = 359 (0x167), region = 40 }
  0x71   : > { %869 = dma.done.wait (%p1227_p7), [#allocation3], 128   ;;  %p1228_p13 = pmov %p1227_p7 }
  0x72   : > { %s266_s7 = sand.u32 1, %s1035_s11   ;;  %s268_s29 = sand.u32 1, %s886_s19  }
  0x73   : > { %871 = vsyncadd (%p1228_p13), [#allocation3], 4294967168  ;;  %s1133_s3 = sshll.u32 %s268_s29, 4  ;;  %s267_s28 = scalar_lea.sflag [#allocation6], %s266_s7 }
  0x74   : > { %s270_s24 = scalar_lea.vmem [#allocation5], %s1133_s3  ;;  %p1229_p11 = scmp.ne.s32.totalorder %s1218_s15, 0 }
  0x76   : > { %873 = dma.done.wait (%p1229_p11), %s267_s28, 512  }
  0x77   : > { %875 = vsyncadd (%p1229_p11), %s267_s28, 4294966784  ;;  %v907_v0 = vmov 0.0   ;;  %v908_v1 = vmov 0   ;;  %s279_s26 = scalar_lea.vmem [#allocation7], %s1133_s3  ;;  %v318_v3 = vld [vmem:[%s270_s24 + $0x8] sm:$0xff]  ;;  %vm321_vm0 = vcmask 64512  }
  0x78   : > { %389 = vmatprep.mubr.f32.mxu1 %v907_v0  ;;  %463 = vmatprep.mubr.f32.mxu0 %v907_v0  ;;  %v320_v2 = vld [vmem:[%s279_s26 + $0x8] sm:$0xff]  ;;  %v319_v4 = vld [vmem:[%s279_s26] sm:$0xff]  ;;  %s644_s10 = sshll.u32 %s894_s21, 8  ;;  %s310_s17 = scalar_lea.vmem [#allocation8], %s1133_s3 }
  0x79   : > { %727 = vset.pattern.permute.xlu0 %v908_v1  ;;  %325 = vmatprep.subr.mxu1 %v320_v2  ;;  %v317_v5 = vld [vmem:[%s270_s24] sm:$0xff]  ;;  %v315_v6 = vld [vmem:[#allocation2] sm:$0xff]  ;;  %s500_s13 = sshll.u32 %s310_s17, 4  ;;  %s1152_s6 = scalar_lea.hbm %s1207_s5, %s644_s10  ;;  %s1154_s13 = int_to_ptr.vmem [resolvable:$true] %s500_s13 }
  0x7a   : > { %399 = vmatprep.subr.mxu0 %v318_v3  ;;  %v314_v7 = vld [vmem:[%s1202_s0] sm:$0xff]  ;;  %326 = vmatpush1.msra.mxu1 %v319_v4  ;;  %s484_s27 = scalar_lea.sflag [#allocation4], %s268_s29  ;;  %s816_s21 = scalar_lea.vmem %s1154_s13, 256 }
  0x7b   : > { %400 = vmatpush1.msra.mxu0 %v317_v5  ;;  %v316_v8 = vld [vmem:[%s1204_s2] sm:$0xff]  ;;  %635 = vmatmul.mubr.msk.f32.vlgmr.msra.gmra.mrb[0].mxu1 %vm321_vm0, %v315_v6  ;;  %p817_p10 = scmp.ne.s32.totalorder %s1154_s13, %s816_s21  ;;  %p1230_p1 = scmp.ne.s32.totalorder %s1219_s9, 0 }
  0x7c   : > { %636 = vmatmul.mubr.msk.f32.vlgmr.msra.gmra.mrb[0].mxu0 %vm321_vm0, %v314_v7  ;;  %472 = vperm.xlu0 %727, %v316_v8   ;;  %s909_s7 = smov [#allocation8]  }
  0x7d   : > { %p818_p2 = pnand %p817_p10, %p1230_p1  ;;  %s820_s3 = sshll.u32 %s909_s7, 4  ;;  %s821_s3 = int_to_ptr.vmem [resolvable:$false] %s820_s3 }
  0x7e   : > { %s822_s28 = scalar_lea.vmem %s821_s3, 512  ;;  %p823_p0 = scmp.lt.s32.totalorder %s1154_s13, %s821_s3 }
  0x7f   : > { %p819_p12 = pneg %p818_p2  ;;  %p824_p3 = scmp.lt.s32.totalorder %s822_s28, %s816_s21 }
  0x81   : > { %p825_p4 = por %p824_p3, %p823_p0 }
  0x83   : > { %p826_p5 = pnand %p825_p4, %p819_p12 }
  0xfb   : > { %v473_v9 = vpop.permute.xlu0 %472 }
 0x14e   : > { %v391_v10 = vpop.f32.mrb[0].mxu1 }
 0x14f   : > { %v465_v11 = vpop.f32.mrb[0].mxu0  ;;  %v393_v13 = vpop.f32.mrb[1].mxu1 }
 0x150   : > { %v466_v12 = vadd.f32 %v465_v11, %v391_v10  ;;  %v467_v14 = vpop.f32.mrb[1].mxu0 }
 0x151   : > { %v468_v15 = vadd.f32 %v467_v14, %v393_v13 }
 0x152   : > { %v475_v16 = vadd.f32 %v473_v9, %v466_v12 }
 0x153   : > { %v476_v17 = vadd.f32 %v473_v9, %v468_v15 }
 0x154   : > { %v477_v18 = vadd.f32 %v475_v16, %v317_v5 }
 0x155   : > { %v478_v19 = vadd.f32 %v476_v17, %v318_v3 }
 0x156   : > { %v479_v20 = vmax.f32 %v477_v18, 0.0 }
 0x157   : > { %v480_v21 = vmax.f32 %v478_v19, 0.0 }
 0x158   : > { %481 = vst [vmem:[%s310_s17] sm:$0xff] %v479_v20 }
 0x159   : > { %482 = vst [vmem:[%s310_s17 + $0x8] sm:$0xff] %v480_v21 }
 0x15a   : > { %829 = shalt.err (!%p826_p5)
}
 0x15b   : > { %s830_s29 = scalar_lea.hbm %s1152_s6, 256  ;;  %s834_s11 = scalar_lea.hbm %s1207_s5, 512 }
 0x15c   : > { %p831_p9 = scmp.ne.s32.totalorder %s1152_s6, %s830_s29  ;;  %p835_p7 = scmp.lt.u32.totalorder %s1152_s6, %s1207_s5 }
 0x15d   : > { %p836_p13 = scmp.lt.u32.totalorder %s834_s11, %s830_s29  ;;  %p838_p10 = scmp.lt.u32.totalorder %s830_s29, %s1152_s6 }
 0x15e   : > { %p832_p8 = pnand %p831_p9, %p1230_p1 }
 0x15f   : > { %p837_p11 = por %p836_p13, %p835_p7 }
 0x160   : > { %p833_p6 = pneg %p832_p8 }
 0x161   : > { %p839_p2 = por %p838_p10, %p837_p11 }
 0x163   : > { %p840_p12 = pnand %p839_p2, %p833_p6 }
 0x165   : > { %843 = shalt.err (!%p840_p12)
}
 0x166   : > { %655 = dma.vmem_to_hbm [thread:$0]  (%p1230_p1), %s1154_s13, 256, %s1152_s6, %s484_s27  }
 0x167 PF: > { %s512_s16 = sand.u32 1, %s882_s18   ;;  %p1231_p0 = scmp.ne.s32.totalorder %s1220_s12, 0 }
 0x168   : > { %p1232_p3 = scmp.ge.s32.totalorder %s902_s23, 2  ;;  %s513_s10 = scalar_lea.sflag [#allocation4], %s512_s16 }
 0x16a   : > { %p669_p4 = pnand %p1232_p3, %p1231_p0 }
 0x16c   : > { %877 = dma.done.wait (!%p669_p4), %s513_s10, 256  }
 0x16d   : > { %879 = vsyncadd (!%p669_p4), %s513_s10, 4294967040  ;;  %s22_s23 = sadd.s32 1, %s902_s23   ;;  %s1233_s9 = sld [smem:[#allocation12_spill]] }
 0x16e   : > { %p19_p5 = scmp.ge.s32.totalorder %s22_s23, 4   ;;  %s1234_s18 = smov %s886_s19 }
 0x16f   : > { %s1235_s19 = smov %s890_s20  ;;  %s1236_s20 = smov %s988_s30 }
 0x170   : > { %s1237_s21 = smov %s898_s22  ;;  %21 = sbr.rel (!%p19_p5) target bundleno = 9 (0x9), region = 101 }
 0x173   : > { %s1238_s22 = smov %s1233_s9 }
 0x177   :  { %518 = vsyncpa [#allocation3], 1 }
 0x178   :  { %520 = vsyncpa [#allocation3 + $0x1], 1 }
 0x179   :  { %521 = vsyncpa [#allocation6], 1 }
 0x17a   :  { %523 = vsyncpa [#allocation6 + $0x1], 1 }
 0x17b   :  { %524 = vsyncpa [#allocation4], 1 }
 0x17c   :  { %526 = vsyncpa [#allocation4 + $0x1], 1 }

</bundles_post_ra>
